<compile_context>
chip_gen: v7x
topology: tpu7x:2x2x1
jax: 0.10.0
libtpu: 0.0.40
codegen_flags: <defaults>
</compile_context>

<pallas_src>
import functools

import jax
import jax.numpy as jnp
from jax import lax
from jax.experimental import pallas as pl
from jax.experimental.pallas import tpu as pltpu


def _ls_ce_kernel(x_ref, tgt_ref, loss_ref, *, smoothing, n_rows, block_rows):
    """One (TM, C) logits tile -> (TM, 1) per-row label-smoothed losses."""
    confidence = 1.0 - smoothing
    tm, c = x_ref.shape

    x_nat = x_ref[...]                       # (TM, C) native dtype (no f32 tile copy)
    tgt = tgt_ref[...]                       # (TM, 1) int32

    # Numerically-stable logsumexp: max in the native dtype (exact for bf16),
    # exp/sum/log in f32.
    m = jnp.max(x_nat, axis=-1, keepdims=True)                          # (TM, 1)
    e = jnp.exp((x_nat - m).astype(jnp.float32))                        # (TM, C) f32
    lse = jnp.log(jnp.sum(e, axis=-1, keepdims=True)) + m.astype(jnp.float32)

    # Fused correction term: one weighted reduction covers both the target
    # gather (confidence * x[target]) and the uniform term (smoothing/C * sum x).
    col = lax.broadcasted_iota(jnp.int32, (1, c), 1)                     # (1, C)
    w = jnp.where(col == tgt, confidence + smoothing / c, smoothing / c)  # (TM, C) f32
    corr = jnp.sum(w * x_nat.astype(jnp.float32), axis=-1, keepdims=True)  # (TM, 1)

    loss = lse - corr                                                    # (TM, 1)

    # Padded rows of a partial last block read undefined logits (possibly
    # producing inf/NaN in those rows).  This select-based mask is
    # load-bearing: it must stay a select (never a multiply) and must happen
    # before any cross-row sum.
    row = (lax.broadcasted_iota(jnp.int32, (tm, 1), 0)
           + pl.program_id(0) * block_rows)
    loss_ref[...] = jnp.where(row < n_rows, loss, 0.0)


def _choose_block_rows(n, c, itemsize):
    """Generation-aware (block_rows, vmem_limit_bytes)."""
    try:
        vmem_bytes = int(pltpu.get_tpu_info().vmem_capacity_bytes)
    except Exception:
        vmem_bytes = 64 * 1024 * 1024  # conservative: v7x per-TensorCore VMEM
    # Use at most ~half of physical VMEM for this kernel; request it explicitly.
    vmem_limit = int(min(vmem_bytes // 2, 96 * 1024 * 1024))

    # Per-row working-set bytes: double-buffered native-dtype input tile plus
    # ~2 f32 tile-sized intermediates (exp temp, fused weighted product) plus
    # small (TM, 1) vectors.  Fit within ~80% of the requested limit.
    per_row = 2 * c * itemsize + 2 * c * 4 + 64
    tm = int(vmem_limit * 0.8) // max(1, per_row)

    # Bigger tiles when C is small (amortize per-grid-step overhead).
    row_cap = 4096 if c * itemsize <= 8192 else 1024
    tm = max(8, min(row_cap, tm))
    tm = (tm // 8) * 8

    n_pad8 = ((n + 7) // 8) * 8
    tm = min(tm, n_pad8)

    # v7x megacore: keep >= 2 blocks on the parallel axis when the batch
    # allows, so both TensorCores get work.
    if n_pad8 > 8:
        while pl.cdiv(n_pad8, tm) < 2 and tm > 8:
            tm = max(8, ((tm // 2) // 8) * 8)
    return tm, vmem_limit


def label_smoothing_cross_entropy(x, target, smoothing=0.1):
    """x: (N, C) logits (f32 or bf16); target: (N,) int class indices.

    Returns the scalar mean label-smoothed cross-entropy, matching the
    PyTorch LabelSmoothingCrossEntropy forward.  Targets are assumed valid
    in [0, C); there is no ignore_index (same as the PyTorch module).
    """
    assert smoothing < 1.0
    n, c = x.shape
    itemsize = jnp.dtype(x.dtype).itemsize
    tm, vmem_limit = _choose_block_rows(n, c, itemsize)
    num_blocks = pl.cdiv(n, tm)
    n_pad = num_blocks * tm

    tgt2d = target.astype(jnp.int32).reshape(n, 1)

    kernel = functools.partial(
        _ls_ce_kernel, smoothing=float(smoothing), n_rows=n, block_rows=tm
    )

    cost = pl.CostEstimate(
        flops=6 * n * c,
        transcendentals=n * c,
        bytes_accessed=n * c * itemsize + n * 4 + n_pad * 4,
    )

    per_row = pl.pallas_call(
        kernel,
        out_shape=jax.ShapeDtypeStruct((n_pad, 1), jnp.float32),
        grid_spec=pltpu.PrefetchScalarGridSpec(
            num_scalar_prefetch=0,
            grid=(num_blocks,),
            in_specs=[
                pl.BlockSpec((tm, c), lambda i: (i, 0)),   # logits tile
                pl.BlockSpec((tm, 1), lambda i: (i, 0)),   # target tile
            ],
            out_specs=pl.BlockSpec((tm, 1), lambda i: (i, 0)),
        ),
        compiler_params=pltpu.CompilerParams(
            dimension_semantics=("parallel",),   # per-block outputs -> both TCs on v7x
            vmem_limit_bytes=vmem_limit,
        ),
        cost_estimate=cost,
    )(x, tgt2d)

    # Padded rows were zeroed in-kernel (via select); mean over the true batch.
    return jnp.sum(per_row) / n


# TODO(synk): for LLM-vocab C (>=64K), add a second "arbitrary" grid axis over
# C with an online logsumexp + running weighted-sum in (TM, 1) scratch so the
# row tile stays large on v7x's 64 MiB VMEM; single-axis tiling assumed here.


def _reference(x, target, smoothing=0.1):
    confidence = 1.0 - smoothing
    logprobs = jax.nn.log_softmax(x.astype(jnp.float32), axis=-1)
    nll = -jnp.take_along_axis(logprobs, target[:, None], axis=-1)[:, 0]
    smooth = -jnp.mean(logprobs, axis=-1)
    return jnp.mean(confidence * nll + smoothing * smooth)


if __name__ == "__main__":
    key = jax.random.PRNGKey(0)
    kx, kt = jax.random.split(key)

    N, C = 8, 32
    x = jax.random.normal(kx, (N, C), dtype=jnp.float32)
    target = jax.random.randint(kt, (N,), 0, C, dtype=jnp.int32)

    loss = label_smoothing_cross_entropy(x, target, smoothing=0.1)
    loss = jax.block_until_ready(loss)

    ref = _reference(x, target, smoothing=0.1)
    assert jnp.allclose(loss, ref, atol=1e-5, rtol=1e-5), (loss, ref)

    print("KERNEL_OK")
</pallas_src>

<mosaic_0001>
module attributes {stable_mosaic.version = 11 : i64} {
  func.func @_ls_ce_kernel(%arg0: i32, %arg1: memref<8x32xf32, #tpu.memory_space<vmem>>, %arg2: memref<8x1xi32, #tpu.memory_space<vmem>>, %arg3: memref<8x1xf32, #tpu.memory_space<vmem>>) attributes {dimension_semantics = [#tpu.dimension_semantics<parallel>], iteration_bounds = array<i64: 1>, scalar_prefetch = 0 : i64, scratch_operands = 0 : i64, tpu.core_type = #tpu.core_type<tc>, window_params = [{transform_indices = @transform_0, window_bounds = array<i64: 8, 32>}, {transform_indices = @transform_1, window_bounds = array<i64: 8, 1>}, {transform_indices = @transform_2, window_bounds = array<i64: 8, 1>}]} {
    %c0 = arith.constant 0 : index
    %c0_0 = arith.constant 0 : index
    %0 = vector.load %arg1[%c0, %c0_0] : memref<8x32xf32, #tpu.memory_space<vmem>>, vector<8x32xf32>
    %c0_1 = arith.constant 0 : index
    %c0_2 = arith.constant 0 : index
    %1 = vector.load %arg2[%c0_1, %c0_2] : memref<8x1xi32, #tpu.memory_space<vmem>>, vector<8x1xi32>
    %cst = arith.constant dense<0xFF800000> : vector<8xf32>
    %2 = vector.multi_reduction <maximumf>, %0, %cst [1] : vector<8x32xf32> to vector<8xf32>
    %3 = vector.shape_cast %2 : vector<8xf32> to vector<8x1xf32>
    %4 = vector.broadcast %3 : vector<8x1xf32> to vector<8x32xf32>
    %5 = arith.subf %0, %4 : vector<8x32xf32>
    %6 = math.exp %5 : vector<8x32xf32>
    %cst_3 = arith.constant dense<0.000000e+00> : vector<8xf32>
    %7 = vector.multi_reduction <add>, %6, %cst_3 [1] : vector<8x32xf32> to vector<8xf32>
    %8 = vector.shape_cast %7 : vector<8xf32> to vector<8x1xf32>
    %9 = math.log %8 : vector<8x1xf32>
    %10 = arith.addf %9, %3 : vector<8x1xf32>
    %11 = tpu.iota {dimensions = array<i32: 1>} : vector<1x32xi32>
    %12 = vector.broadcast %11 : vector<1x32xi32> to vector<8x32xi32>
    %13 = vector.broadcast %1 : vector<8x1xi32> to vector<8x32xi32>
    %14 = arith.cmpi eq, %12, %13 : vector<8x32xi32>
    %cst_4 = arith.constant 0.903124988 : f32
    %cst_5 = arith.constant 3.125000e-03 : f32
    %15 = vector.broadcast %cst_4 : f32 to vector<8x32xf32>
    %16 = vector.broadcast %cst_5 : f32 to vector<8x32xf32>
    %17 = arith.select %14, %15, %16 : vector<8x32xi1>, vector<8x32xf32>
    %18 = arith.mulf %17, %0 : vector<8x32xf32>
    %cst_6 = arith.constant dense<0.000000e+00> : vector<8xf32>
    %19 = vector.multi_reduction <add>, %18, %cst_6 [1] : vector<8x32xf32> to vector<8xf32>
    %20 = vector.shape_cast %19 : vector<8xf32> to vector<8x1xf32>
    %21 = arith.subf %10, %20 : vector<8x1xf32>
    %22 = tpu.iota {dimensions = array<i32: 0>} : vector<8x1xi32>
    %c8_i32 = arith.constant 8 : i32
    %23 = arith.muli %arg0, %c8_i32 : i32
    %24 = vector.broadcast %23 : i32 to vector<8x1xi32>
    %25 = arith.addi %22, %24 : vector<8x1xi32>
    %c8_i32_7 = arith.constant 8 : i32
    %26 = vector.broadcast %c8_i32_7 : i32 to vector<8x1xi32>
    %27 = arith.cmpi slt, %25, %26 : vector<8x1xi32>
    %cst_8 = arith.constant 0.000000e+00 : f32
    %28 = vector.broadcast %cst_8 : f32 to vector<8x1xf32>
    %29 = arith.select %27, %21, %28 : vector<8x1xi1>, vector<8x1xf32>
    %c0_9 = arith.constant 0 : index
    %c0_10 = arith.constant 0 : index
    %30 = vector.load %arg3[%c0_9, %c0_10] : memref<8x1xf32, #tpu.memory_space<vmem>>, vector<8x1xf32>
    tpu.vector_store %arg3[%c0_9, %c0_10], %29 {strides = array<i32>} : memref<8x1xf32, #tpu.memory_space<vmem>>, vector<8x1xf32>,
    return
  }
  func.func @transform_0(%arg0: i32) -> (i32, i32) {
    %c0_i32 = arith.constant 0 : i32
    %c0_i32_0 = arith.constant 0 : i32
    return %arg0, %c0_i32 : i32, i32
  }
  func.func @transform_1(%arg0: i32) -> (i32, i32) {
    %c0_i32 = arith.constant 0 : i32
    %c0_i32_0 = arith.constant 0 : i32
    return %arg0, %c0_i32 : i32, i32
  }
  func.func @transform_2(%arg0: i32) -> (i32, i32) {
    %c0_i32 = arith.constant 0 : i32
    %c0_i32_0 = arith.constant 0 : i32
    return %arg0, %c0_i32 : i32, i32
  }
}

</mosaic_0001>

<bundles_post_ra>
// kernel: tpu_custom_call.1
= control target key start
LH: loop header
LB: loop body
LE: loop exit
PB: predicated region body
PF: predicated region fallthrough
CT: control target
= control target key end

     0   :  { %vm13_vm0 = vcmask 261120   ;;  %v58_v1 = vmov 0   ;;  %v26_v6 = vlaneseq  ;;  %v59_v10 = vmov 0.003125   ;;  %s87_s0 = inlined_call_operand.vmem [shape: f32[8,32], index: 0, kind: input, shape index: {}]   ;;  %s88_s1 = inlined_call_operand.vmem [shape: s32[8,1], index: 1, kind: input, shape index: {}]   ;;  %s89_s2 = inlined_call_operand.vmem [shape: f32[8,1], index: 2, kind: output, shape index: {}]  }
   0x1   :  { %v11_v0 = vld [vmem:[%s87_s0] sm:$0xff]  ;;  %53 = vset.pattern.permute.xlu0 %v58_v1  ;;  %vm45_vm2 = vcmask 7168  }
   0x2   :  { %v14_v2 = vsel %vm13_vm0, %v11_v0, -inf  ;;  %v12_v3 = vld [vmem:[%s88_s1] sm:$0xff]  ;;  %v27_v8 = vand.u32 127, %v26_v6 }
   0x3   :  { %15 = vmax.xlane.f32.xlu0 %v14_v2 }
  0x19   :  { %29 = vperm.xlu0 %53, %v12_v3  }
  0x90   :  { %v16_v4 = vpop.xlane.xlu0 %15 }
  0x91   :  { %v17_v5 = vsub.f32 %v11_v0, %v16_v4 }
  0x93   :  { %v18_v7 = vmul.f32 1.442695, %v17_v5 }
  0x95   :  { %54 = vpow2.f32 %v18_v7 }
  0x98   :  { %v30_v9 = vpop.permute.xlu0 %29 }
  0x99   :  { %vm31_vm1 = vcmp.eq.s32.totalorder %v27_v8, %v30_v9 }
  0x9a   :  { %v32_v11 = vsel %vm31_vm1, 0.903125, %v59_v10 }
  0x9b   :  { %v33_v12 = vmul.f32 %v32_v11, %v11_v0 }
  0x9d   :  { %v34_v15 = vsel %vm13_vm0, %v33_v12, 0.0 }
  0x9f   :  { %v55_v13 = vpop.eup %54 }
  0xa0   :  { %v20_v14 = vsel %vm13_vm0, %v55_v13, 0.0 }
  0xa1   :  { %21 = vadd.xlane.f32.xlu1 %v20_v14 }
  0xa5   :  { %35 = vadd.xlane.f32.xlu1 %v34_v15 }
 0x12e   :  { %v22_v16 = vpop.xlane.xlu1 %21 }
 0x12f   :  { %56 = vlog2.f32 %v22_v16 }
 0x132   :  { %v36_v19 = vpop.xlane.xlu1 %35 }
 0x139   :  { %v57_v17 = vpop.eup %56 }
 0x13a   :  { %v24_v18 = vmul.f32 0.6931472, %v57_v17 }
 0x13c   :  { %v25_v20 = vadd.f32 %v24_v18, %v16_v4 }
 0x13e   :  { %v37_v21 = vsub.f32 %v25_v20, %v36_v19 }
 0x140   :  { %46 = vst.msk [vmem:[%s89_s2] sm:$0xff] %vm45_vm2, %v37_v21 }

</bundles_post_ra>
